<compile_context>
chip_gen: v6e
topology: v6e:2x2x1
jax: 0.10.0
libtpu: 0.0.40
codegen_flags: <defaults>
</compile_context>

<pallas_src>
import functools

import jax
import jax.numpy as jnp
from jax.experimental import pallas as pl
from jax.experimental.pallas import tpu as pltpu


def _round_up(v, m):
    return ((v + m - 1) // m) * m


# ------------------------------ Pallas kernel ------------------------------

def _linear_kernel(x_ref, w_ref, b_ref, o_ref):
    # x: [tm, K], w: [K, Np] (pre-transposed once at init), b: [1, Np] -> o: [tm, Np]
    acc = jnp.dot(x_ref[...], w_ref[...], preferred_element_type=jnp.float32)
    o_ref[...] = (acc + b_ref[...].astype(jnp.float32)).astype(o_ref.dtype)


def _choose_tm(m, block_m):
    tm = min(block_m, _round_up(max(m, 1), 8))
    if m > 8:
        # ensure >=2 grid steps when possible so v7x's 2nd TensorCore gets work
        tm = min(tm, _round_up(pl.cdiv(m, 2), 8))
    return max(tm, 8)


def linear_pallas(x, w_kn, b_row, n_out, *, block_m=256):
    """y = x @ w_kn + b_row, returned as [M, n_out].

    w_kn: [K, Np]  -- PyTorch weight already transposed + lane-padded (init-time).
    b_row: [1, Np] -- bias already lane-padded (init-time).
    """
    M, K = x.shape
    Kw, Np = w_kn.shape
    assert K == Kw and b_row.shape == (1, Np)

    tm = _choose_tm(M, block_m)
    Mp = _round_up(M, tm)
    xp = x if Mp == M else jnp.pad(x, ((0, Mp - M), (0, 0)))   # only pad M if needed

    # VMEM budget: double-buffered x/out tiles + (conservatively double-buffered)
    # resident weight & bias, plus headroom.  Capped well below every chip's
    # physical VMEM (v7x: 64 MiB).
    isz = max(jnp.dtype(x.dtype).itemsize, 4)
    needed = 2 * (tm * K + tm * Np + K * Np + Np) * isz
    vmem_limit = int(min(48 * 2**20, max(32 * 2**20, int(needed * 1.25) + (2 << 20))))

    out = pl.pallas_call(
        _linear_kernel,
        out_shape=jax.ShapeDtypeStruct((Mp, Np), x.dtype),
        grid=(Mp // tm,),
        in_specs=[
            pl.BlockSpec((tm, K), lambda i: (i, 0)),     # x tile; full-K block, no K pad
            pl.BlockSpec((K, Np), lambda i: (0, 0)),     # whole weight, resident
            pl.BlockSpec((1, Np), lambda i: (0, 0)),     # bias row, resident
        ],
        out_specs=pl.BlockSpec((tm, Np), lambda i: (i, 0)),   # lane-dense output
        compiler_params=pltpu.CompilerParams(
            dimension_semantics=("parallel",),           # shard M tiles across TCs
            vmem_limit_bytes=vmem_limit),
    )(xp, w_kn, b_row)
    return out[:M, :n_out]


# --------------------------------- model -----------------------------------

_SMALL_GEMM_THRESHOLD = 1 << 20   # below this M*K*N, XLA's fused dot beats launch cost


def prepare_linear_params(w, b):
    """One-time layout plumbing: [out,in] weight -> [K, Np]; bias -> [1, Np]."""
    N, K = w.shape
    Np = _round_up(N, 128)
    w_kn = jnp.pad(jnp.transpose(w), ((0, 0), (0, Np - N)))
    b_row = jnp.pad(b, (0, Np - N)).reshape(1, Np)
    return w_kn, b_row


def perceptron_forward(x, params, *, force_pallas=False):
    w, b = params["fc1_w"], params["fc1_b"]
    N, K = w.shape
    M = x.shape[0]
    if not force_pallas and M * K * N < _SMALL_GEMM_THRESHOLD:
        return x @ w.T + b                               # tiny-problem fast path
    return linear_pallas(x, params["fc1_w_kn"], params["fc1_b_row"], N)


def init_params(key, input_dim=3, output_dim=2):
    kw, kb = jax.random.split(key)
    bound = 1.0 / (input_dim ** 0.5)                     # PyTorch nn.Linear default init
    w = jax.random.uniform(kw, (output_dim, input_dim), jnp.float32, -bound, bound)
    b = jax.random.uniform(kb, (output_dim,), jnp.float32, -bound, bound)
    w_kn, b_row = prepare_linear_params(w, b)            # hoisted out of the forward path
    return {"fc1_w": w, "fc1_b": b, "fc1_w_kn": w_kn, "fc1_b_row": b_row}


if __name__ == "__main__":
    key = jax.random.PRNGKey(0)
    kx, kp, kx2, kp2 = jax.random.split(key, 4)

    fwd_pallas = jax.jit(functools.partial(perceptron_forward, force_pallas=True))
    fwd_auto = jax.jit(perceptron_forward)

    # --- spec-default shapes: Linear(3, 2), batch 8 ---
    batch, input_dim, output_dim = 8, 3, 2
    x = jax.random.normal(kx, (batch, input_dim), jnp.float32)
    params = init_params(kp, input_dim, output_dim)

    out = jax.block_until_ready(fwd_pallas(x, params))   # exercise the Pallas kernel
    ref = x @ params["fc1_w"].T + params["fc1_b"]
    assert out.shape == (batch, output_dim) and out.dtype == x.dtype
    assert jnp.allclose(out, ref, atol=1e-5, rtol=1e-5)

    out_auto = jax.block_until_ready(fwd_auto(x, params))  # size-thresholded path
    assert jnp.allclose(out_auto, ref, atol=1e-5, rtol=1e-5)

    # --- a modestly larger case exercising M tiling (2 grid steps) + N padding/slicing ---
    M2, K2, N2 = 384, 192, 130
    x2 = jax.random.normal(kx2, (M2, K2), jnp.float32)
    params2 = init_params(kp2, K2, N2)
    out2 = jax.block_until_ready(fwd_pallas(x2, params2))
    ref2 = jnp.dot(x2, params2["fc1_w"].T, precision="highest") + params2["fc1_b"]
    assert out2.shape == (M2, N2)
    # loose tolerance: MXU default-precision f32 matmul may take bf16 passes
    assert jnp.allclose(out2, ref2, atol=5e-2, rtol=5e-2)

    print("KERNEL_OK")
</pallas_src>

<mosaic_0001>
module attributes {stable_mosaic.version = 11 : i64} {
  func.func @_linear_kernel(%arg0: i32, %arg1: memref<8x3xf32, #tpu.memory_space<vmem>>, %arg2: memref<3x128xf32, #tpu.memory_space<vmem>>, %arg3: memref<1x128xf32, #tpu.memory_space<vmem>>, %arg4: memref<8x128xf32, #tpu.memory_space<vmem>>) attributes {dimension_semantics = [#tpu.dimension_semantics<parallel>], iteration_bounds = array<i64: 1>, scalar_prefetch = 0 : i64, scratch_operands = 0 : i64, tpu.core_type = #tpu.core_type<tc>, window_params = [{transform_indices = @transform_0, window_bounds = array<i64: 8, 3>}, {pipeline_mode = #tpu.pipeline_mode<synchronous>, transform_indices = @transform_1, window_bounds = array<i64: 3, 128>}, {pipeline_mode = #tpu.pipeline_mode<synchronous>, transform_indices = @transform_2, window_bounds = array<i64: 1, 128>}, {transform_indices = @transform_3, window_bounds = array<i64: 8, 128>}]} {
    %c0 = arith.constant 0 : index
    %c0_0 = arith.constant 0 : index
    %0 = vector.load %arg1[%c0, %c0_0] : memref<8x3xf32, #tpu.memory_space<vmem>>, vector<8x3xf32>
    %c0_1 = arith.constant 0 : index
    %c0_2 = arith.constant 0 : index
    %1 = vector.load %arg2[%c0_1, %c0_2] : memref<3x128xf32, #tpu.memory_space<vmem>>, vector<3x128xf32>
    %cst = arith.constant dense<0.000000e+00> : vector<8x128xf32>
    %2 = tpu.matmul %0, %1, %cst {dimension_numbers = #tpu.dot_dimension_numbers<[1], [0], [0], [1], [0, 0, 1, 1], [], []>} : vector<8x3xf32>, vector<3x128xf32>, vector<8x128xf32> -> vector<8x128xf32>
    %c0_3 = arith.constant 0 : index
    %c0_4 = arith.constant 0 : index
    %3 = vector.load %arg3[%c0_3, %c0_4] : memref<1x128xf32, #tpu.memory_space<vmem>>, vector<1x128xf32>
    %4 = vector.broadcast %3 : vector<1x128xf32> to vector<8x128xf32>
    %5 = arith.addf %2, %4 : vector<8x128xf32>
    %c0_5 = arith.constant 0 : index
    %c0_6 = arith.constant 0 : index
    %6 = vector.load %arg4[%c0_5, %c0_6] : memref<8x128xf32, #tpu.memory_space<vmem>>, vector<8x128xf32>
    tpu.vector_store %arg4[%c0_5, %c0_6], %5 {strides = array<i32>} : memref<8x128xf32, #tpu.memory_space<vmem>>, vector<8x128xf32>,
    return
  }
  func.func @transform_0(%arg0: i32) -> (i32, i32) {
    %c0_i32 = arith.constant 0 : i32
    %c0_i32_0 = arith.constant 0 : i32
    return %arg0, %c0_i32 : i32, i32
  }
  func.func @transform_1(%arg0: i32) -> (i32, i32) {
    %c0_i32 = arith.constant 0 : i32
    %c0_i32_0 = arith.constant 0 : i32
    %c0_i32_1 = arith.constant 0 : i32
    return %c0_i32, %c0_i32_0 : i32, i32
  }
  func.func @transform_2(%arg0: i32) -> (i32, i32) {
    %c0_i32 = arith.constant 0 : i32
    %c0_i32_0 = arith.constant 0 : i32
    %c0_i32_1 = arith.constant 0 : i32
    return %c0_i32, %c0_i32_0 : i32, i32
  }
  func.func @transform_3(%arg0: i32) -> (i32, i32) {
    %c0_i32 = arith.constant 0 : i32
    %c0_i32_0 = arith.constant 0 : i32
    return %arg0, %c0_i32 : i32, i32
  }
}

</mosaic_0001>

<bundles_post_ra>
// kernel: perceptron_forward.1
= control target key start
LH: loop header
LB: loop body
LE: loop exit
PB: predicated region body
PF: predicated region fallthrough
CT: control target
= control target key end

     0   :  { %vm27_vm0 = vcmask 1042432   ;;  %vm23_vm1 = vcmask 23552   ;;  %v118_v0 = vmov 0.0   ;;  %vm119_vm2 = vmmov 0   ;;  %s152_s1 = inlined_call_operand.vmem [shape: f32[3,128], index: 1, kind: input, shape index: {}]   ;;  %s153_s0 = inlined_call_operand.vmem [shape: f32[8,3], index: 0, kind: input, shape index: {}]   ;;  %s154_s2 = inlined_call_operand.vmem [shape: f32[1,128], index: 2, kind: input, shape index: {}]   ;;  %s155_s3 = inlined_call_operand.vmem [shape: f32[8,128], index: 3, kind: output, shape index: {}]  }
   0x1   :  { %111 = vmatprep.subr.mxu0 %v118_v0  ;;  %v15_v1 = vld [vmem:[%s152_s1] sm:$0x7]  ;;  %113 = vmatprep.mubr.msk.f32.mxu0 %vm119_vm2, %v118_v0 }
   0x2   :  { %v14_v2 = vld [vmem:[%s153_s0] sm:$0xff]  ;;  %112 = vmatpush3.msk.msra.mxu0 %vm27_vm0, %v15_v1 }
   0x3   :  { %114 = vmatmul.mubr.msk.f32.vlgmr.msra.gmra.mxu0 %vm23_vm1, %v14_v2  ;;  %v106_v3 = vld [vmem:[%s154_s2] ss:$0 sm:$0xff] }
  0xc3   :  { %v97_v4 = vpop.f32.mrf.mxu0 }
  0xc4   :  { %v98_v5 = vadd.f32 %v106_v3, %v97_v4 }
  0xc5   :  { %v115_v6 = vpop.f32.mrf.mxu0 }
  0xc6   :  { %101 = vst [vmem:[%s155_s3] sm:$0xff] %v98_v5 }

</bundles_post_ra>
